<compile_context>
chip_gen: v6e
topology: v6e:2x2x1
jax: 0.10.0
libtpu: 0.0.40
codegen_flags: <defaults>
</compile_context>

<pallas_src>
import functools

import jax
import jax.numpy as jnp
from jax import lax
from jax.experimental import pallas as pl
from jax.experimental.pallas import tpu as pltpu

IMQ_SCALES = (0.1, 0.2, 0.5, 1.0, 2.0, 5.0, 10.0)


def _latent_mmd_kernel(z_ref, e_ref, zt_ref, stat_ref, *, cbase, n):
    """tanh + fused-Gram multi-scale IMQ MMD statistic (single VMEM tile)."""
    nf = float(n)

    # --- tanh(z) (EUP) -----------------------------------------------------
    zt = jnp.tanh(z_ref[...].astype(jnp.float32))
    zt_ref[...] = zt.astype(zt_ref.dtype)

    e = e_ref[...].astype(jnp.float32)

    # --- one fused Gram matmul on X = [tanh(z); e] -------------------------
    x = jnp.concatenate([zt, e], axis=0)                      # (2n, d)
    gram = lax.dot_general(                                    # (2n, 2n)
        x, x, (((1,), (1,)), ((), ())),
        preferred_element_type=jnp.float32)
    norms = jnp.sum(x * x, axis=1, keepdims=True)              # (2n, 1)
    # NOTE: no clamp to 0 — the reference does not clamp either, and the only
    # affected entries are (near-)diagonal ones whose contribution is ~1e-7.
    dist = norms + norms.T - 2.0 * gram                        # (2n, 2n)

    # --- multi-scale IMQ: accumulate two scalars, never a full k_sum -------
    total = jnp.float32(0.0)   # sum over the whole (2n, 2n) kernel matrix
    cross = jnp.float32(0.0)   # sum over the qz x pz cross block [:n, n:]
    for scale in IMQ_SCALES:
        c = jnp.float32(cbase * scale)
        k = c / (c + dist)
        total = total + jnp.sum(k)
        cross = cross + jnp.sum(k[:n, n:])

    # Diagonal of the kernel matrix is analytically len(SCALES) * 2n
    # (dist_ii ~ 0 -> c/(c+0) = 1); the reference masks it out of res1.
    diag = jnp.float32(len(IMQ_SCALES) * 2 * n)

    # within-set off-diagonal sum = total - 2*cross - diag   (dist symmetric,
    # so both cross blocks sum to `cross`).
    stat = (total - 2.0 * cross - diag) / (nf * nf - nf) \
        - 2.0 * cross / (nf * nf)
    stat_ref[...] = jnp.reshape(stat, (1, 1))


def latent_layer_forward(z, key, opts):
    """Returns (tanh(z), e, mmd_loss) matching LatentLayer.forward (IMQ MMD)."""
    assert opts["mmd_kernel"] == "IMQ", "only IMQ branch implemented in Pallas"
    sigma2_p = opts["pz_scale"] ** 2
    if opts["pz"] == "normal":
        cbase = 2.0 * opts["zdim"] * sigma2_p
    elif opts["pz"] == "sphere":
        cbase = 2.0
    elif opts["pz"] == "uniform":
        cbase = float(opts["zdim"])
    else:
        raise ValueError(opts["pz"])

    n, d = z.shape
    assert n >= 2, "MMD statistic needs at least 2 samples (divides by n^2 - n)"

    # e ~ Uniform(-1, 1), same shape as z (torch.rand_like(z) * 2 - 1).
    e = jax.random.uniform(key, (n, d), dtype=jnp.float32, minval=-1.0, maxval=1.0)

    kernel = functools.partial(_latent_mmd_kernel, cbase=cbase, n=n)

    z_tanh, stat = pl.pallas_call(
        kernel,
        out_shape=(
            jax.ShapeDtypeStruct((n, d), z.dtype),       # tanh(z)
            jax.ShapeDtypeStruct((1, 1), jnp.float32),   # mmd statistic
        ),
        in_specs=[
            pl.BlockSpec(memory_space=pltpu.MemorySpace.VMEM),   # z
            pl.BlockSpec(memory_space=pltpu.MemorySpace.VMEM),   # e
        ],
        out_specs=(
            pl.BlockSpec(memory_space=pltpu.MemorySpace.VMEM),
            pl.BlockSpec(memory_space=pltpu.MemorySpace.VMEM),
        ),
    )(z, e)
    return z_tanh, e, stat[0, 0]


def reference_forward(z, e, opts):
    """Pure-JAX reference (mirrors the PyTorch mmd_penalty IMQ branch)."""
    zt = jnp.tanh(z)
    n = z.shape[0]
    nf = float(n)
    cbase = float(opts["zdim"])  # pz == 'uniform'
    norms_qz = jnp.sum(zt**2, axis=1, keepdims=True)
    norms_pz = jnp.sum(e**2, axis=1, keepdims=True)
    d_qz = norms_qz + norms_qz.T - 2 * zt @ zt.T
    d_pz = norms_pz + norms_pz.T - 2 * e @ e.T
    d_qp = norms_qz + norms_pz.T - 2 * zt @ e.T
    mask = 1.0 - jnp.eye(n)
    stat = 0.0
    for s in IMQ_SCALES:
        c = cbase * s
        r1 = (c / (c + d_qz) + c / (c + d_pz)) * mask
        r1 = r1.sum() / (nf * nf - nf)
        r2 = (c / (c + d_qp)).sum() * 2.0 / (nf * nf)
        stat += r1 - r2
    return zt, stat


if __name__ == "__main__":
    key = jax.random.PRNGKey(0)
    key_z, key_e = jax.random.split(key)

    N, ZDIM = 8, 32  # batch=8, latent dim=32
    z = jax.random.normal(key_z, (N, ZDIM), dtype=jnp.float32)

    opts = {"pz_scale": 1.0, "mmd_kernel": "IMQ", "pz": "uniform", "zdim": ZDIM}

    z_tanh, e, mmd_loss = latent_layer_forward(z, key_e, opts)
    jax.block_until_ready((z_tanh, e, mmd_loss))

    # e must be a valid Uniform(-1, 1) draw.
    assert bool(jnp.all(e >= -1.0)) and bool(jnp.all(e <= 1.0))

    # Reference uses the same e (the module samples e internally; we sample it
    # in the wrapper and feed the identical draw to both paths).
    zt_ref, mmd_ref = reference_forward(z, e, opts)
    assert jnp.allclose(z_tanh, zt_ref, atol=1e-5, rtol=1e-5)
    assert jnp.allclose(mmd_loss, mmd_ref, atol=1e-5, rtol=1e-5)

    print("KERNEL_OK")
</pallas_src>

<mosaic_0001>
module attributes {stable_mosaic.version = 11 : i64} {
  func.func @_latent_mmd_kernel(%arg0: memref<8x32xf32, #tpu.memory_space<vmem>>, %arg1: memref<8x32xf32, #tpu.memory_space<vmem>>, %arg2: memref<8x32xf32, #tpu.memory_space<vmem>>, %arg3: memref<1x1xf32, #tpu.memory_space<vmem>>) attributes {dimension_semantics = [], scalar_prefetch = 0 : i64, scratch_operands = 0 : i64, tpu.core_type = #tpu.core_type<tc>} {
    %c0 = arith.constant 0 : index
    %c0_0 = arith.constant 0 : index
    %0 = vector.load %arg0[%c0, %c0_0] : memref<8x32xf32, #tpu.memory_space<vmem>>, vector<8x32xf32>
    %1 = math.tanh %0 : vector<8x32xf32>
    %c0_1 = arith.constant 0 : index
    %c0_2 = arith.constant 0 : index
    %2 = vector.load %arg2[%c0_1, %c0_2] : memref<8x32xf32, #tpu.memory_space<vmem>>, vector<8x32xf32>
    tpu.vector_store %arg2[%c0_1, %c0_2], %1 {strides = array<i32>} : memref<8x32xf32, #tpu.memory_space<vmem>>, vector<8x32xf32>,
    %c0_3 = arith.constant 0 : index
    %c0_4 = arith.constant 0 : index
    %3 = vector.load %arg1[%c0_3, %c0_4] : memref<8x32xf32, #tpu.memory_space<vmem>>, vector<8x32xf32>
    %4 = tpu.concatenate %1, %3 in 0 : vector<8x32xf32>, vector<8x32xf32> -> vector<16x32xf32>
    %cst = arith.constant dense<0.000000e+00> : vector<16x16xf32>
    %5 = tpu.matmul %4, %4, %cst {dimension_numbers = #tpu.dot_dimension_numbers<[1], [1], [0], [0], [0, 0, 1, 0], [], []>} : vector<16x32xf32>, vector<16x32xf32>, vector<16x16xf32> -> vector<16x16xf32>
    %6 = arith.mulf %4, %4 : vector<16x32xf32>
    %cst_5 = arith.constant dense<0.000000e+00> : vector<16xf32>
    %7 = vector.multi_reduction <add>, %6, %cst_5 [1] : vector<16x32xf32> to vector<16xf32>
    %8 = vector.shape_cast %7 : vector<16xf32> to vector<16x1xf32>
    %9 = tpu.transpose %8, [1, 0] : vector<16x1xf32> -> vector<1x16xf32>
    %10 = vector.broadcast %8 : vector<16x1xf32> to vector<16x16xf32>
    %11 = vector.broadcast %9 : vector<1x16xf32> to vector<16x16xf32>
    %12 = arith.addf %10, %11 : vector<16x16xf32>
    %cst_6 = arith.constant 2.000000e+00 : f32
    %13 = vector.broadcast %cst_6 : f32 to vector<16x16xf32>
    %14 = arith.mulf %13, %5 : vector<16x16xf32>
    %15 = arith.subf %12, %14 : vector<16x16xf32>
    %cst_7 = arith.constant 3.200000e+00 : f32
    %16 = vector.broadcast %cst_7 : f32 to vector<16x16xf32>
    %17 = arith.addf %16, %15 : vector<16x16xf32>
    %cst_8 = arith.constant 3.200000e+00 : f32
    %18 = vector.broadcast %cst_8 : f32 to vector<16x16xf32>
    %19 = arith.divf %18, %17 : vector<16x16xf32>
    %20 = vector.shape_cast %19 : vector<16x16xf32> to vector<1x16x16xf32>
    %cst_9 = arith.constant dense<0.000000e+00> : vector<1xf32>
    %21 = vector.multi_reduction <add>, %20, %cst_9 [1, 2] : vector<1x16x16xf32> to vector<1xf32>
    %22 = vector.shape_cast %21 : vector<1xf32> to vector<1x1x1xf32>
    %23 = vector.extract %22[0, 0, 0] : f32 from vector<1x1x1xf32>
    %cst_10 = arith.constant 0.000000e+00 : f32
    %24 = arith.addf %cst_10, %23 : f32
    %25 = vector.extract_strided_slice %19 {offsets = [0, 8], sizes = [8, 8], strides = [1, 1]} : vector<16x16xf32> to vector<8x8xf32>
    %26 = vector.shape_cast %25 : vector<8x8xf32> to vector<1x8x8xf32>
    %cst_11 = arith.constant dense<0.000000e+00> : vector<1xf32>
    %27 = vector.multi_reduction <add>, %26, %cst_11 [1, 2] : vector<1x8x8xf32> to vector<1xf32>
    %28 = vector.shape_cast %27 : vector<1xf32> to vector<1x1x1xf32>
    %29 = vector.extract %28[0, 0, 0] : f32 from vector<1x1x1xf32>
    %cst_12 = arith.constant 0.000000e+00 : f32
    %30 = arith.addf %cst_12, %29 : f32
    %cst_13 = arith.constant 6.400000e+00 : f32
    %31 = vector.broadcast %cst_13 : f32 to vector<16x16xf32>
    %32 = arith.addf %31, %15 : vector<16x16xf32>
    %cst_14 = arith.constant 6.400000e+00 : f32
    %33 = vector.broadcast %cst_14 : f32 to vector<16x16xf32>
    %34 = arith.divf %33, %32 : vector<16x16xf32>
    %35 = vector.shape_cast %34 : vector<16x16xf32> to vector<1x16x16xf32>
    %cst_15 = arith.constant dense<0.000000e+00> : vector<1xf32>
    %36 = vector.multi_reduction <add>, %35, %cst_15 [1, 2] : vector<1x16x16xf32> to vector<1xf32>
    %37 = vector.shape_cast %36 : vector<1xf32> to vector<1x1x1xf32>
    %38 = vector.extract %37[0, 0, 0] : f32 from vector<1x1x1xf32>
    %39 = arith.addf %24, %38 : f32
    %40 = vector.extract_strided_slice %34 {offsets = [0, 8], sizes = [8, 8], strides = [1, 1]} : vector<16x16xf32> to vector<8x8xf32>
    %41 = vector.shape_cast %40 : vector<8x8xf32> to vector<1x8x8xf32>
    %cst_16 = arith.constant dense<0.000000e+00> : vector<1xf32>
    %42 = vector.multi_reduction <add>, %41, %cst_16 [1, 2] : vector<1x8x8xf32> to vector<1xf32>
    %43 = vector.shape_cast %42 : vector<1xf32> to vector<1x1x1xf32>
    %44 = vector.extract %43[0, 0, 0] : f32 from vector<1x1x1xf32>
    %45 = arith.addf %30, %44 : f32
    %cst_17 = arith.constant 1.600000e+01 : f32
    %46 = vector.broadcast %cst_17 : f32 to vector<16x16xf32>
    %47 = arith.addf %46, %15 : vector<16x16xf32>
    %cst_18 = arith.constant 1.600000e+01 : f32
    %48 = vector.broadcast %cst_18 : f32 to vector<16x16xf32>
    %49 = arith.divf %48, %47 : vector<16x16xf32>
    %50 = vector.shape_cast %49 : vector<16x16xf32> to vector<1x16x16xf32>
    %cst_19 = arith.constant dense<0.000000e+00> : vector<1xf32>
    %51 = vector.multi_reduction <add>, %50, %cst_19 [1, 2] : vector<1x16x16xf32> to vector<1xf32>
    %52 = vector.shape_cast %51 : vector<1xf32> to vector<1x1x1xf32>
    %53 = vector.extract %52[0, 0, 0] : f32 from vector<1x1x1xf32>
    %54 = arith.addf %39, %53 : f32
    %55 = vector.extract_strided_slice %49 {offsets = [0, 8], sizes = [8, 8], strides = [1, 1]} : vector<16x16xf32> to vector<8x8xf32>
    %56 = vector.shape_cast %55 : vector<8x8xf32> to vector<1x8x8xf32>
    %cst_20 = arith.constant dense<0.000000e+00> : vector<1xf32>
    %57 = vector.multi_reduction <add>, %56, %cst_20 [1, 2] : vector<1x8x8xf32> to vector<1xf32>
    %58 = vector.shape_cast %57 : vector<1xf32> to vector<1x1x1xf32>
    %59 = vector.extract %58[0, 0, 0] : f32 from vector<1x1x1xf32>
    %60 = arith.addf %45, %59 : f32
    %cst_21 = arith.constant 3.200000e+01 : f32
    %61 = vector.broadcast %cst_21 : f32 to vector<16x16xf32>
    %62 = arith.addf %61, %15 : vector<16x16xf32>
    %cst_22 = arith.constant 3.200000e+01 : f32
    %63 = vector.broadcast %cst_22 : f32 to vector<16x16xf32>
    %64 = arith.divf %63, %62 : vector<16x16xf32>
    %65 = vector.shape_cast %64 : vector<16x16xf32> to vector<1x16x16xf32>
    %cst_23 = arith.constant dense<0.000000e+00> : vector<1xf32>
    %66 = vector.multi_reduction <add>, %65, %cst_23 [1, 2] : vector<1x16x16xf32> to vector<1xf32>
    %67 = vector.shape_cast %66 : vector<1xf32> to vector<1x1x1xf32>
    %68 = vector.extract %67[0, 0, 0] : f32 from vector<1x1x1xf32>
    %69 = arith.addf %54, %68 : f32
    %70 = vector.extract_strided_slice %64 {offsets = [0, 8], sizes = [8, 8], strides = [1, 1]} : vector<16x16xf32> to vector<8x8xf32>
    %71 = vector.shape_cast %70 : vector<8x8xf32> to vector<1x8x8xf32>
    %cst_24 = arith.constant dense<0.000000e+00> : vector<1xf32>
    %72 = vector.multi_reduction <add>, %71, %cst_24 [1, 2] : vector<1x8x8xf32> to vector<1xf32>
    %73 = vector.shape_cast %72 : vector<1xf32> to vector<1x1x1xf32>
    %74 = vector.extract %73[0, 0, 0] : f32 from vector<1x1x1xf32>
    %75 = arith.addf %60, %74 : f32
    %cst_25 = arith.constant 6.400000e+01 : f32
    %76 = vector.broadcast %cst_25 : f32 to vector<16x16xf32>
    %77 = arith.addf %76, %15 : vector<16x16xf32>
    %cst_26 = arith.constant 6.400000e+01 : f32
    %78 = vector.broadcast %cst_26 : f32 to vector<16x16xf32>
    %79 = arith.divf %78, %77 : vector<16x16xf32>
    %80 = vector.shape_cast %79 : vector<16x16xf32> to vector<1x16x16xf32>
    %cst_27 = arith.constant dense<0.000000e+00> : vector<1xf32>
    %81 = vector.multi_reduction <add>, %80, %cst_27 [1, 2] : vector<1x16x16xf32> to vector<1xf32>
    %82 = vector.shape_cast %81 : vector<1xf32> to vector<1x1x1xf32>
    %83 = vector.extract %82[0, 0, 0] : f32 from vector<1x1x1xf32>
    %84 = arith.addf %69, %83 : f32
    %85 = vector.extract_strided_slice %79 {offsets = [0, 8], sizes = [8, 8], strides = [1, 1]} : vector<16x16xf32> to vector<8x8xf32>
    %86 = vector.shape_cast %85 : vector<8x8xf32> to vector<1x8x8xf32>
    %cst_28 = arith.constant dense<0.000000e+00> : vector<1xf32>
    %87 = vector.multi_reduction <add>, %86, %cst_28 [1, 2] : vector<1x8x8xf32> to vector<1xf32>
    %88 = vector.shape_cast %87 : vector<1xf32> to vector<1x1x1xf32>
    %89 = vector.extract %88[0, 0, 0] : f32 from vector<1x1x1xf32>
    %90 = arith.addf %75, %89 : f32
    %cst_29 = arith.constant 1.600000e+02 : f32
    %91 = vector.broadcast %cst_29 : f32 to vector<16x16xf32>
    %92 = arith.addf %91, %15 : vector<16x16xf32>
    %cst_30 = arith.constant 1.600000e+02 : f32
    %93 = vector.broadcast %cst_30 : f32 to vector<16x16xf32>
    %94 = arith.divf %93, %92 : vector<16x16xf32>
    %95 = vector.shape_cast %94 : vector<16x16xf32> to vector<1x16x16xf32>
    %cst_31 = arith.constant dense<0.000000e+00> : vector<1xf32>
    %96 = vector.multi_reduction <add>, %95, %cst_31 [1, 2] : vector<1x16x16xf32> to vector<1xf32>
    %97 = vector.shape_cast %96 : vector<1xf32> to vector<1x1x1xf32>
    %98 = vector.extract %97[0, 0, 0] : f32 from vector<1x1x1xf32>
    %99 = arith.addf %84, %98 : f32
    %100 = vector.extract_strided_slice %94 {offsets = [0, 8], sizes = [8, 8], strides = [1, 1]} : vector<16x16xf32> to vector<8x8xf32>
    %101 = vector.shape_cast %100 : vector<8x8xf32> to vector<1x8x8xf32>
    %cst_32 = arith.constant dense<0.000000e+00> : vector<1xf32>
    %102 = vector.multi_reduction <add>, %101, %cst_32 [1, 2] : vector<1x8x8xf32> to vector<1xf32>
    %103 = vector.shape_cast %102 : vector<1xf32> to vector<1x1x1xf32>
    %104 = vector.extract %103[0, 0, 0] : f32 from vector<1x1x1xf32>
    %105 = arith.addf %90, %104 : f32
    %cst_33 = arith.constant 3.200000e+02 : f32
    %106 = vector.broadcast %cst_33 : f32 to vector<16x16xf32>
    %107 = arith.addf %106, %15 : vector<16x16xf32>
    %cst_34 = arith.constant 3.200000e+02 : f32
    %108 = vector.broadcast %cst_34 : f32 to vector<16x16xf32>
    %109 = arith.divf %108, %107 : vector<16x16xf32>
    %110 = vector.shape_cast %109 : vector<16x16xf32> to vector<1x16x16xf32>
    %cst_35 = arith.constant dense<0.000000e+00> : vector<1xf32>
    %111 = vector.multi_reduction <add>, %110, %cst_35 [1, 2] : vector<1x16x16xf32> to vector<1xf32>
    %112 = vector.shape_cast %111 : vector<1xf32> to vector<1x1x1xf32>
    %113 = vector.extract %112[0, 0, 0] : f32 from vector<1x1x1xf32>
    %114 = arith.addf %99, %113 : f32
    %115 = vector.extract_strided_slice %109 {offsets = [0, 8], sizes = [8, 8], strides = [1, 1]} : vector<16x16xf32> to vector<8x8xf32>
    %116 = vector.shape_cast %115 : vector<8x8xf32> to vector<1x8x8xf32>
    %cst_36 = arith.constant dense<0.000000e+00> : vector<1xf32>
    %117 = vector.multi_reduction <add>, %116, %cst_36 [1, 2] : vector<1x8x8xf32> to vector<1xf32>
    %118 = vector.shape_cast %117 : vector<1xf32> to vector<1x1x1xf32>
    %119 = vector.extract %118[0, 0, 0] : f32 from vector<1x1x1xf32>
    %120 = arith.addf %105, %119 : f32
    %cst_37 = arith.constant 2.000000e+00 : f32
    %121 = arith.mulf %cst_37, %120 : f32
    %122 = arith.subf %114, %121 : f32
    %cst_38 = arith.constant 1.120000e+02 : f32
    %123 = arith.subf %122, %cst_38 : f32
    %cst_39 = arith.constant 5.600000e+01 : f32
    %124 = arith.divf %123, %cst_39 : f32
    %cst_40 = arith.constant 2.000000e+00 : f32
    %125 = arith.mulf %cst_40, %120 : f32
    %cst_41 = arith.constant 6.400000e+01 : f32
    %126 = arith.divf %125, %cst_41 : f32
    %127 = arith.subf %124, %126 : f32
    %128 = vector.broadcast %127 : f32 to vector<1x1xf32>
    %c0_42 = arith.constant 0 : index
    %c0_43 = arith.constant 0 : index
    %129 = vector.load %arg3[%c0_42, %c0_43] : memref<1x1xf32, #tpu.memory_space<vmem>>, vector<1x1xf32>
    tpu.vector_store %arg3[%c0_42, %c0_43], %128 {strides = array<i32>} : memref<1x1xf32, #tpu.memory_space<vmem>>, vector<1x1xf32>,
    return
  }
}

</mosaic_0001>

<bundles_post_ra>
// kernel: tpu_custom_call.1
= control target key start
LH: loop header
LB: loop body
LE: loop exit
PB: predicated region body
PF: predicated region fallthrough
CT: control target
= control target key end

     0   :  { %9 = vsyncpa [#allocation3], 0  ;;  %s684_s0 = inlined_call_operand.hbm [shape: f32[8,32], index: 0, kind: input, shape index: {}]   ;;  %s685_s1 = inlined_call_operand.hbm [shape: f32[8,32], index: 1, kind: input, shape index: {}]   ;;  %s686_s2 = inlined_call_operand.hbm [shape: f32[8,32], index: 2, kind: output, shape index: {0}]   ;;  %s687_s3 = inlined_call_operand.hbm [shape: f32[1,1], index: 3, kind: output, shape index: {1}]  }
   0x1   :  { %10 = vsyncpa [#allocation6], 0 }
   0x2   :  { %11 = vsyncpa [#allocation4], 0 }
   0x3   :  { %12 = vsyncpa [#allocation9], 0  ;;  %s626_s12 = smov [#allocation2]   ;;  %s627_s14 = smov [#allocation5]  }
   0x4   :  { %s19_s13 = sshll.u32 %s626_s12, 4  ;;  %s29_s15 = sshll.u32 %s627_s14, 4  ;;  %s20_s13 = int_to_ptr.vmem [resolvable:$true] %s19_s13  ;;  %s30_s15 = int_to_ptr.vmem [resolvable:$true] %s29_s15 }
   0x5   :  { %s546_s16 = scalar_lea.vmem %s20_s13, 128  ;;  %p551_p1 = scmp.lt.s32.totalorder %s20_s13, %s20_s13 }
   0x6   :  { %p547_p0 = scmp.ne.s32.totalorder %s20_s13, %s546_s16  ;;  %p552_p2 = scmp.lt.s32.totalorder %s546_s16, %s546_s16 }
   0x8   :  { %p553_p3 = por %p552_p2, %p551_p1 }
   0xa   :  { %p554_p4 = pnand %p553_p3, %p547_p0 }
   0xc   :  { %557 = shalt.err (!%p554_p4)
}
   0xd   :  { %22 = dma.hbm_to_vmem [thread:$0]  %s684_s0, 128, %s20_s13, [#allocation3]  }
   0xe   :  { %s566_s19 = scalar_lea.vmem %s30_s15, 128  ;;  %p571_p6 = scmp.lt.s32.totalorder %s30_s15, %s30_s15 }
   0xf   :  { %p567_p5 = scmp.ne.s32.totalorder %s30_s15, %s566_s19  ;;  %p572_p7 = scmp.lt.s32.totalorder %s566_s19, %s566_s19 }
  0x11   :  { %p573_p8 = por %p572_p7, %p571_p6 }
  0x13   :  { %p574_p9 = pnand %p573_p8, %p567_p5 }
  0x15   :  { %577 = shalt.err (!%p574_p9)
}
  0x16   :  { %32 = dma.hbm_to_vmem [thread:$0]  %s685_s1, 128, %s30_s15, [#allocation6]  }
  0x17   :  { %618 = dma.done.wait [#allocation3], 128  }
  0x18   :  { %619 = vsyncadd [#allocation3], 4294967168 }
  0x19   :  { %620 = dma.done.wait [#allocation6], 128  }
  0x1a   :  { %621 = vsyncadd [#allocation6], 4294967168  ;;  %v39_v0 = vld [vmem:[#allocation2] sm:$0xff]  ;;  %vm41_vm0 = vcmask 261120   ;;  %v43_v1 = vld [vmem:[#allocation5] sm:$0xff]  ;;  %v165_v9 = vlaneseq  ;;  %s628_s0 = smov 120  }
  0x1b   :  { %508 = vtanh.f32 %v39_v0  ;;  %467 = vmatprep.subr.msk.mxu0 %vm41_vm0, %v43_v1  ;;  %v126_v4 = vmul.f32 %v43_v1, %v43_v1  ;;  %vm181_vm1 = vcmask 130048   ;;  %vm199_vm2 = vcmask 64512   ;;  %s629_s1 = smov [#allocation7]  }
  0x1c   :  { %468 = vmatpush3.xpose.msk.msra.mxu0 %vm41_vm0, %v43_v1  ;;  %v166_v10 = vshrl.u32 %v165_v9, 7  ;;  %s434_s22 = sshll.u32 %s629_s1, 4  ;;  %s435_s22 = int_to_ptr.vmem [resolvable:$true] %s434_s22 }
  0x1d   :  { %v130_v6 = vsel %vm41_vm0, %v126_v4, 0.0  ;;  %s578_s23 = scalar_lea.vmem %s435_s22, 128  ;;  %p583_p11 = scmp.lt.s32.totalorder %s435_s22, %s435_s22 }
  0x1e   :  { %v167_v12 = vsub.s32 0, %v166_v10  ;;  %p579_p10 = scmp.ne.s32.totalorder %s435_s22, %s578_s23  ;;  %p584_p12 = scmp.lt.s32.totalorder %s578_s23, %s578_s23 }
  0x20   :  { %p585_p13 = por %p584_p12, %p583_p11 }
  0x22   :  { %p586_p0 = pnand %p585_p13, %p579_p10 }
  0x28   :  { %v509_v2 = vpop.eup %508 }
  0x29   :  { %v125_v3 = vmul.f32 %v509_v2, %v509_v2  ;;  %42 = vst.msk [vmem:[#allocation7] sm:$0xff] %vm41_vm0, %v509_v2  ;;  %469 = vmatprep.subr.msk.mxu0 %vm41_vm0, %v509_v2  ;;  %471 = vmatprep.mubr.msk.f32.mxu0 %vm41_vm0, %v509_v2 }
  0x2a   :  { %470 = vmatpush3.xpose.msk.msra.mxu0 %vm41_vm0, %v509_v2 }
  0x2b   :  { %v127_v5 = vsel %vm41_vm0, %v125_v3, 0.0 }
  0x2c   :  { %128 = vadd.xlane.f32.xlu0 %v127_v5 }
  0x2d   :  { %472 = vmatmul.mubr.msk.f32.vlgmr.msra.gmra.mxu0 %vm41_vm0, %v43_v1 }
  0x30   :  { %131 = vadd.xlane.f32.xlu0 %v130_v6 }
  0xb5   :  { %v129_v7 = vpop.xlane.xlu0 %128 }
  0xb6   :  { %133 = vxpose.xlu1.b32.start [1/2] (short) (narrow) %v129_v7, 8 }
  0xb9   :  { %v132_v8 = vpop.xlane.xlu0 %131 }
  0xba   :  { %134 = vxpose.xlu1.b32.end [2/2] (short) (narrow) %v132_v8, 8 }
  0xed   :  { %v473_v11 = vpop.f32.mrf.mxu0 }
  0xee   :  { %v172_v25 = vmul.f32 2.0, %v473_v11 }
  0xef   :  { %v116_v14 = vpop.f32.mrf.mxu0 }
  0xf0   :  { %v171_v17 = vmul.f32 2.0, %v116_v14 }
 0x132   :  { %v149_v13 = vpop.trf.xlu1 }
 0x133   :  { %v168_v15 = vrot.slane %v149_v13, %v167_v12 }
 0x135   :  { %v169_v16 = vadd.f32 %v168_v15, %v129_v7  ;;  %v170_v22 = vadd.f32 %v168_v15, %v132_v8 }
 0x137   :  { %v173_v18 = vsub.f32 %v169_v16, %v171_v17  ;;  %v174_v28 = vsub.f32 %v170_v22, %v172_v25 }
 0x139   :  { %v211_v19 = vadd.f32 6.4, %v173_v18  ;;  %v175_v20 = vadd.f32 3.2, %v173_v18  ;;  %v245_v21 = vadd.f32 16.0, %v173_v18  ;;  %v313_v23 = vadd.f32 64.0, %v173_v18 }
 0x13a   :  { %v279_v24 = vadd.f32 32.0, %v173_v18  ;;  %v381_v26 = vadd.f32 320.0, %v173_v18  ;;  %v347_v27 = vadd.f32 160.0, %v173_v18  ;;  %v314_v29 = vadd.f32 64.0, %v174_v28 }
 0x13b   :  { %510 = vrcp.f32 %v211_v19  ;;  %v348_v30 = vadd.f32 160.0, %v174_v28  ;;  %v382_v31 = vadd.f32 320.0, %v174_v28  ;;  %v176_v60 = vadd.f32 3.2, %v174_v28 }
 0x13c   :  { %512 = vrcp.f32 %v175_v20  ;;  %v212_v62 = vadd.f32 6.4, %v174_v28  ;;  %v246_v63 = vadd.f32 16.0, %v174_v28  ;;  %v280_v0 = vadd.f32 32.0, %v174_v28 }
 0x13d   :  { %514 = vrcp.f32 %v245_v21 }
 0x13e   :  { %516 = vrcp.f32 %v313_v23 }
 0x13f   :  { %518 = vrcp.f32 %v279_v24 }
 0x140   :  { %520 = vrcp.f32 %v381_v26 }
 0x141   :  { %522 = vrcp.f32 %v347_v27 }
 0x142   :  { %524 = vrcp.f32 %v314_v29 }
 0x143   :  { %526 = vrcp.f32 %v348_v30 }
 0x144   :  { %528 = vrcp.f32 %v382_v31 }
 0x145   :  { %530 = vrcp.f32 %v176_v60 }
 0x146   :  { %532 = vrcp.f32 %v212_v62 }
 0x147   :  { %534 = vrcp.f32 %v246_v63 }
 0x148   :  { %v511_v32 = vpop.eup %510  ;;  %536 = vrcp.f32 %v280_v0 }
 0x149   :  { %v513_v33 = vpop.eup %512  ;;  %v214_v34 = vmul.f32 6.4, %v511_v32 }
 0x14a   :  { %v515_v35 = vpop.eup %514  ;;  %v178_v36 = vmul.f32 3.2, %v513_v33 }
 0x14b   :  { %v517_v37 = vpop.eup %516  ;;  %231 = vrot.lane.b32.xlu0 %v214_v34, %s628_s0  ;;  %v248_v41 = vmul.f32 16.0, %v515_v35  ;;  %v217_v10 = vsel %vm181_vm1, %v214_v34, 0.0 }
 0x14c   :  { %v519_v38 = vpop.eup %518  ;;  %196 = vrot.lane.b32.xlu1 %v178_v36, %s628_s0  ;;  %v316_v39 = vmul.f32 64.0, %v517_v37  ;;  %v182_v6 = vsel %vm181_vm1, %v178_v36, 0.0 }
 0x14d   :  { %v521_v40 = vpop.eup %520  ;;  %v282_v47 = vmul.f32 32.0, %v519_v38  ;;  %v251_v13 = vsel %vm181_vm1, %v248_v41, 0.0 }
 0x14e   :  { %v523_v42 = vpop.eup %522  ;;  %v384_v43 = vmul.f32 320.0, %v521_v40  ;;  %v319_v44 = vsel %vm181_vm1, %v316_v39, 0.0 }
 0x14f   :  { %265 = vrot.lane.b32.xlu0 %v248_v41, %s628_s0  ;;  %v350_v45 = vmul.f32 160.0, %v523_v42  ;;  %v525_v49 = vpop.eup %524  ;;  %v285_v18 = vsel %vm181_vm1, %v282_v47, 0.0 }
 0x150   :  { %333 = vrot.lane.b32.xlu1 %v316_v39, %s628_s0  ;;  %v387_v46 = vsel %vm181_vm1, %v384_v43, 0.0  ;;  %v527_v50 = vpop.eup %526  ;;  %v318_v51 = vmul.f32 64.0, %v525_v49 }
 0x151   :  { %v353_v48 = vsel %vm181_vm1, %v350_v45, 0.0  ;;  %v529_v52 = vpop.eup %528  ;;  %v352_v53 = vmul.f32 160.0, %v527_v50 }
 0x152   :  { %v320_v54 = vsel %vm181_vm1, %v318_v51, 0.0  ;;  %v386_v55 = vmul.f32 320.0, %v529_v52  ;;  %v531_v1 = vpop.eup %530 }
 0x153   :  { %299 = vrot.lane.b32.xlu0 %v282_v47, %s628_s0  ;;  %v321_v56 = vadd.f32 %v320_v54, %v319_v44  ;;  %v354_v57 = vsel %vm181_vm1, %v352_v53, 0.0  ;;  %v533_v2 = vpop.eup %532  ;;  %v180_v3 = vmul.f32 3.2, %v531_v1 }
 0x154   :  { %401 = vrot.lane.b32.xlu1 %v384_v43, %s628_s0  ;;  %v355_v58 = vadd.f32 %v354_v57, %v353_v48  ;;  %v388_v59 = vsel %vm181_vm1, %v386_v55, 0.0  ;;  %v535_v4 = vpop.eup %534  ;;  %v216_v5 = vmul.f32 6.4, %v533_v2 }
 0x155   :  { %v389_v61 = vadd.f32 %v388_v59, %v387_v46  ;;  %v183_v7 = vsel %vm181_vm1, %v180_v3, 0.0  ;;  %v250_v8 = vmul.f32 16.0, %v535_v4  ;;  %v537_v9 = vpop.eup %536 }
 0x156   :  { %v218_v11 = vsel %vm181_vm1, %v216_v5, 0.0  ;;  %v184_v12 = vadd.f32 %v183_v7, %v182_v6  ;;  %v284_v15 = vmul.f32 32.0, %v537_v9 }
 0x157   :  { %367 = vrot.lane.b32.xlu0 %v350_v45, %s628_s0  ;;  %v252_v14 = vsel %vm181_vm1, %v250_v8, 0.0  ;;  %v219_v16 = vadd.f32 %v218_v11, %v217_v10 }
 0x158   :  { %v253_v17 = vadd.f32 %v252_v14, %v251_v13  ;;  %v286_v19 = vsel %vm181_vm1, %v284_v15, 0.0 }
 0x159   :  { %v287_v20 = vadd.f32 %v286_v19, %v285_v18 }
 0x176   :  { %185 = vadd.xlane.f32.xlu0 %v184_v12 }
 0x178   :  { %220 = vadd.xlane.f32.xlu1 %v219_v16 }
 0x17a   :  { %254 = vadd.xlane.f32.xlu0 %v253_v17 }
 0x17e   :  { %288 = vadd.xlane.f32.xlu0 %v287_v20 }
 0x1bd   :  { %v232_v21 = vpop.permute.xlu0 %231 }
 0x1be   :  { %v197_v22 = vpop.permute.xlu1 %196  ;;  %v234_v26 = vsel %vm199_vm2, %v232_v21, 0.0 }
 0x1bf   :  { %v200_v23 = vsel %vm199_vm2, %v197_v22, 0.0 }
 0x1c0   :  { %201 = vadd.xlane.f32.xlu0 %v200_v23 }
 0x1c1   :  { %v266_v24 = vpop.permute.xlu0 %265 }
 0x1c2   :  { %v268_v25 = vsel %vm199_vm2, %v266_v24, 0.0  ;;  %v334_v29 = vpop.permute.xlu1 %333 }
 0x1c3   :  { %269 = vadd.xlane.f32.xlu1 %v268_v25  ;;  %v336_v30 = vsel %vm199_vm2, %v334_v29, 0.0 }
 0x1c4   :  { %235 = vadd.xlane.f32.xlu0 %v234_v26 }
 0x1c5   :  { %v300_v27 = vpop.permute.xlu0 %299 }
 0x1c6   :  { %v302_v28 = vsel %vm199_vm2, %v300_v27, 0.0  ;;  %v402_v33 = vpop.permute.xlu1 %401 }
 0x1c7   :  { %303 = vadd.xlane.f32.xlu1 %v302_v28  ;;  %v404_v34 = vsel %vm199_vm2, %v402_v33, 0.0 }
 0x1c8   :  { %322 = vadd.xlane.f32.xlu0 %v321_v56 }
 0x1c9   :  { %v368_v31 = vpop.permute.xlu0 %367 }
 0x1ca   :  { %v370_v32 = vsel %vm199_vm2, %v368_v31, 0.0 }
 0x1cb   :  { %337 = vadd.xlane.f32.xlu1 %v336_v30 }
 0x1cc   :  { %356 = vadd.xlane.f32.xlu0 %v355_v58 }
 0x1cf   :  { %371 = vadd.xlane.f32.xlu1 %v370_v32 }
 0x1d0   :  { %390 = vadd.xlane.f32.xlu0 %v389_v61 }
 0x1d3   :  { %405 = vadd.xlane.f32.xlu1 %v404_v34 }
 0x1ff   :  { %v186_v35 = vpop.xlane.xlu0 %185 }
 0x200   :  { %v187_v36 = vrot.slane %v186_v35, 4 }
 0x202   :  { %v188_v37 = vadd.f32 %v187_v36, %v186_v35 }
 0x204   :  { %v189_v38 = vrot.slane %v188_v37, 2 }
 0x206   :  { %v190_v39 = vadd.f32 %v189_v38, %v188_v37 }
 0x208   :  { %v191_v40 = vrot.slane %v190_v39, 1 }
 0x20a   :  { %v192_v41 = vadd.f32 %v191_v40, %v190_v39 }
 0x20c   :  { %474 = vpush %v192_v41 }
 0x20d   :  { %589 = shalt.err (!%p586_p0)
}
 0x20e   :  { %437 = dma.vmem_to_hbm [thread:$0]  %s435_s22, 128, %s686_s2, [#allocation4]   ;;  %v221_v42 = vpop.xlane.xlu1 %220  ;;  %v255_v43 = vpop.xlane.xlu0 %254  ;;  %vm426_vm3 = vcmask 0  }
 0x20f   :  { %v222_v44 = vrot.slane %v221_v42, 4  ;;  %v256_v47 = vrot.slane %v255_v43, 4 }
 0x211   :  { %v223_v45 = vadd.f32 %v222_v44, %v221_v42  ;;  %v257_v50 = vadd.f32 %v256_v47, %v255_v43 }
 0x212   :  { %v289_v46 = vpop.xlane.xlu0 %288 }
 0x213   :  { %v290_v48 = vrot.slane %v289_v46, 4  ;;  %v224_v49 = vrot.slane %v223_v45, 2  ;;  %v258_v57 = vrot.slane %v257_v50, 2 }
 0x215   :  { %v291_v53 = vadd.f32 %v290_v48, %v289_v46  ;;  %v225_v56 = vadd.f32 %v224_v49, %v223_v45  ;;  %v259_v7 = vadd.f32 %v258_v57, %v257_v50 }
 0x217   :  { %v292_v62 = vrot.slane %v291_v53, 2  ;;  %v226_v3 = vrot.slane %v225_v56, 1  ;;  %v260_v22 = vrot.slane %v259_v7, 1 }
 0x219   :  { %v293_v13 = vadd.f32 %v292_v62, %v291_v53  ;;  %v227_v17 = vadd.f32 %v226_v3, %v225_v56  ;;  %v261_v38 = vadd.f32 %v260_v22, %v259_v7 }
 0x21b   :  { %v294_v28 = vrot.slane %v293_v13, 1 }
 0x21d   :  { %v295_v44 = vadd.f32 %v294_v28, %v293_v13 }
 0x23d   :  { %s475_s2 = spop %474 }
 0x249   :  { %v202_v51 = vpop.xlane.xlu0 %201 }
 0x24a   :  { %v203_v52 = vrot.slane %v202_v51, 4 }
 0x24c   :  { %v204_v54 = vadd.f32 %v203_v52, %v202_v51  ;;  %v270_v55 = vpop.xlane.xlu1 %269 }
 0x24d   :  { %v271_v58 = vrot.slane %v270_v55, 4  ;;  %v236_v59 = vpop.xlane.xlu0 %235 }
 0x24e   :  { %v205_v60 = vrot.slane %v204_v54, 2  ;;  %v237_v61 = vrot.slane %v236_v59, 4 }
 0x24f   :  { %v272_v63 = vadd.f32 %v271_v58, %v270_v55 }
 0x250   :  { %v238_v0 = vadd.f32 %v237_v61, %v236_v59  ;;  %v304_v1 = vpop.xlane.xlu1 %303  ;;  %v206_v2 = vadd.f32 %v205_v60, %v204_v54 }
 0x251   :  { %v273_v4 = vrot.slane %v272_v63, 2  ;;  %v305_v5 = vrot.slane %v304_v1, 4  ;;  %v323_v6 = vpop.xlane.xlu0 %322 }
 0x252   :  { %v239_v8 = vrot.slane %v238_v0, 2  ;;  %v324_v9 = vrot.slane %v323_v6, 4  ;;  %v207_v10 = vrot.slane %v206_v2, 1 }
 0x253   :  { %v306_v11 = vadd.f32 %v305_v5, %v304_v1  ;;  %v274_v12 = vadd.f32 %v273_v4, %v272_v63 }
 0x254   :  { %v325_v14 = vadd.f32 %v324_v9, %v323_v6  ;;  %v338_v15 = vpop.xlane.xlu1 %337  ;;  %v208_v16 = vadd.f32 %v207_v10, %v206_v2  ;;  %v240_v18 = vadd.f32 %v239_v8, %v238_v0 }
 0x255   :  { %v307_v19 = vrot.slane %v306_v11, 2  ;;  %v339_v20 = vrot.slane %v338_v15, 4  ;;  %v357_v21 = vpop.xlane.xlu0 %356  ;;  %v275_v23 = vrot.slane %v274_v12, 1 }
 0x256   :  { %v326_v24 = vrot.slane %v325_v14, 2  ;;  %v358_v25 = vrot.slane %v357_v21, 4  ;;  %476 = vpush %v208_v16  ;;  %v241_v26 = vrot.slane %v240_v18, 1 }
 0x257   :  { %v340_v27 = vadd.f32 %v339_v20, %v338_v15  ;;  %478 = vpush %v227_v17  ;;  %v308_v29 = vadd.f32 %v307_v19, %v306_v11  ;;  %v276_v33 = vadd.f32 %v275_v23, %v274_v12 }
 0x258   :  { %v359_v30 = vadd.f32 %v358_v25, %v357_v21  ;;  %v372_v31 = vpop.xlane.xlu1 %371  ;;  %v242_v32 = vadd.f32 %v241_v26, %v240_v18  ;;  %v327_v34 = vadd.f32 %v326_v24, %v325_v14 }
 0x259   :  { %v341_v35 = vrot.slane %v340_v27, 2  ;;  %v373_v36 = vrot.slane %v372_v31, 4  ;;  %v391_v37 = vpop.xlane.xlu0 %390  ;;  %v309_v39 = vrot.slane %v308_v29, 1 }
 0x25a   :  { %v360_v40 = vrot.slane %v359_v30, 2  ;;  %v392_v41 = vrot.slane %v391_v37, 4  ;;  %480 = vpush %v242_v32  ;;  %v328_v42 = vrot.slane %v327_v34, 1 }
 0x25b   :  { %v374_v43 = vadd.f32 %v373_v36, %v372_v31  ;;  %482 = vpush %v261_v38  ;;  %v310_v45 = vadd.f32 %v309_v39, %v308_v29  ;;  %v342_v46 = vadd.f32 %v341_v35, %v340_v27 }
 0x25c   :  { %v393_v47 = vadd.f32 %v392_v41, %v391_v37  ;;  %484 = vpush %v276_v33  ;;  %v406_v48 = vpop.xlane.xlu1 %405  ;;  %v329_v49 = vadd.f32 %v328_v42, %v327_v34  ;;  %v361_v50 = vadd.f32 %v360_v40, %v359_v30 }
 0x25d   :  { %v375_v51 = vrot.slane %v374_v43, 2  ;;  %486 = vpush %v295_v44  ;;  %v407_v52 = vrot.slane %v406_v48, 4  ;;  %v343_v53 = vrot.slane %v342_v46, 1 }
 0x25e   :  { %v394_v54 = vrot.slane %v393_v47, 2  ;;  %488 = vpush %v310_v45  ;;  %v362_v55 = vrot.slane %v361_v50, 1 }
 0x25f   :  { %v408_v56 = vadd.f32 %v407_v52, %v406_v48  ;;  %490 = vpush %v329_v49  ;;  %v344_v57 = vadd.f32 %v343_v53, %v342_v46  ;;  %v376_v58 = vadd.f32 %v375_v51, %v374_v43 }
 0x260   :  { %v395_v59 = vadd.f32 %v394_v54, %v393_v47  ;;  %v363_v60 = vadd.f32 %v362_v55, %v361_v50 }
 0x261   :  { %v409_v61 = vrot.slane %v408_v56, 2  ;;  %492 = vpush %v344_v57  ;;  %v377_v62 = vrot.slane %v376_v58, 1 }
 0x262   :  { %494 = vpush %v363_v60  ;;  %v396_v63 = vrot.slane %v395_v59, 1 }
 0x263   :  { %v410_v0 = vadd.f32 %v409_v61, %v408_v56  ;;  %v378_v1 = vadd.f32 %v377_v62, %v376_v58 }
 0x264   :  { %v397_v2 = vadd.f32 %v396_v63, %v395_v59 }
 0x265   :  { %496 = vpush %v378_v1  ;;  %v411_v3 = vrot.slane %v410_v0, 1 }
 0x266   :  { %498 = vpush %v397_v2 }
 0x267   :  { %v412_v4 = vadd.f32 %v411_v3, %v410_v0 }
 0x269   :  { %500 = vpush %v412_v4 }
 0x287   :  { %s477_s26 = spop %476 }
 0x288   :  { %s479_s27 = spop %478 }
 0x289   :  { %s229_s5 = sadd.f32 %s479_s27, %s475_s2 }
 0x28b   :  { %s481_s28 = spop %480 }
 0x28c   :  { %s483_s29 = spop %482  ;;  %s244_s30 = sadd.f32 %s481_s28, %s477_s26 }
 0x28d   :  { %s485_s4 = spop %484  ;;  %s263_s7 = sadd.f32 %s483_s29, %s229_s5 }
 0x28e   :  { %s487_s6 = spop %486  ;;  %s278_s9 = sadd.f32 %s485_s4, %s244_s30 }
 0x28f   :  { %s489_s8 = spop %488  ;;  %s297_s12 = sadd.f32 %s487_s6, %s263_s7 }
 0x290   :  { %s491_s10 = spop %490  ;;  %s312_s13 = sadd.f32 %s489_s8, %s278_s9 }
 0x291   :  { %s331_s17 = sadd.f32 %s491_s10, %s297_s12  ;;  %s630_s26 = smov [#allocation8]  }
 0x292   :  { %s493_s11 = spop %492  ;;  %s444_s27 = sshll.u32 %s630_s26, 4  ;;  %s445_s27 = int_to_ptr.vmem [resolvable:$true] %s444_s27 }
 0x293   :  { %s495_s14 = spop %494  ;;  %s346_s16 = sadd.f32 %s493_s11, %s312_s13 }
 0x294   :  { %s365_s20 = sadd.f32 %s495_s14, %s331_s17  ;;  %s598_s29 = scalar_lea.vmem %s445_s27, 16 }
 0x295   :  { %p599_p1 = scmp.ne.s32.totalorder %s445_s27, %s598_s29  ;;  %s602_s30 = scalar_lea.vmem %s445_s27, 32 }
 0x296   :  { %s497_s15 = spop %496  ;;  %p603_p2 = scmp.lt.s32.totalorder %s445_s27, %s445_s27 }
 0x297   :  { %s380_s18 = sadd.f32 %s497_s15, %s346_s16  ;;  %s499_s19 = spop %498 }
 0x298   :  { %s399_s1 = sadd.f32 %s499_s19, %s365_s20  ;;  %p604_p3 = scmp.lt.s32.totalorder %s602_s30, %s598_s29 }
 0x29a   :  { %s501_s21 = spop %500  ;;  %p605_p4 = por %p604_p3, %p603_p2 }
 0x29b   :  { %s414_s0 = sadd.f32 %s501_s21, %s380_s18 }
 0x29c   :  { %p606_p5 = pnand %p605_p4, %p599_p1 }
 0x29d   :  { %s415_s22 = smul.f32 2.0, %s414_s0 }
 0x29f   :  { %s416_s23 = ssub.f32 %s399_s1, %s415_s22  ;;  %s423_s25 = smul.f32 0.015625, %s415_s22 }
 0x2a1   :  { %s462_s24 = sadd.f32 -112.0, %s416_s23 }
 0x2a3   :  { %s420_s2 = smul.f32 0.017857144, %s462_s24 }
 0x2a5   :  { %s424_s28 = ssub.f32 %s420_s2, %s423_s25 }
 0x2a7   :  { %v425_v5 = vstv %s424_s28 }
 0x2a8   :  { %427 = vst.msk [vmem:[#allocation8] sm:$0x1] %vm426_vm3, %v425_v5 }
 0x2a9   :  { %609 = shalt.err (!%p606_p5)
}
 0x2aa   :  { %447 = dma.vmem_to_hbm [thread:$0]  %s445_s27, 16, %s687_s3, [#allocation9]  }
 0x2ab   :  { %622 = dma.done.wait [#allocation4], 128  }
 0x2ac   :  { %623 = vsyncadd [#allocation4], 4294967168 }
 0x2ad   :  { %624 = dma.done.wait [#allocation9], 16  }
 0x2ae   :  { %625 = vsyncadd [#allocation9], 4294967280 }
 0x2af   :  { %454 = vsyncpa [#allocation3], 1 }
 0x2b0   :  { %455 = vsyncpa [#allocation6], 1 }
 0x2b1   :  { %456 = vsyncpa [#allocation4], 1 }
 0x2b2   :  { %457 = vsyncpa [#allocation9], 1 }

</bundles_post_ra>
